<compile_context>
chip_gen: v7x
topology: tpu7x:2x2x1
jax: 0.10.0
libtpu: 0.0.40
codegen_flags: <defaults>
</compile_context>

<pallas_src>
import math

import jax
import jax.numpy as jnp
from jax.experimental import pallas as pl
from jax.experimental.pallas import tpu as pltpu

D_MODEL = 8
SEQ_LEN = 7
DROPOUT = 0.1  # unused in eval-mode forward (identity)

_TARGET_ROWS = 2048    # ~1 MiB f32 tile for the lane-dense (rows, 128) path
_TARGET_BATCH = 8192   # ~1.75 MiB f32 tile for the (B, S*D) fallback path


def _add_pe_kernel(x_ref, pe_ref, o_ref):
    # pe_ref either broadcasts against x_ref ((1, F) + (TB, F)) or matches it
    # exactly ((TB, 128) + (TB, 128)); either way a single VPU add per vreg.
    o_ref[...] = x_ref[...] + pe_ref[...]


def _sinusoidal_pe(seq_len: int, d_model: int) -> jax.Array:
    """PE table identical to the torch buffer construction (even d_model)."""
    pos = jnp.arange(seq_len, dtype=jnp.float32)[:, None]                 # (S, 1)
    div_term = jnp.exp(jnp.arange(0, d_model, 2, dtype=jnp.float32)
                       * (-math.log(10000.0) / d_model))                  # (D/2,)
    ang = pos * div_term                                                  # (S, D/2)
    # interleave -> [sin0, cos0, sin1, cos1, ...] == torch pe[:,0::2]/pe[:,1::2]
    return jnp.stack([jnp.sin(ang), jnp.cos(ang)], axis=-1).reshape(seq_len, d_model)


@jax.jit
def positional_encoding_forward(x: jax.Array) -> jax.Array:
    """x: (B, S, D) with S <= SEQ_LEN, D == D_MODEL. Returns x + pe (eval-mode dropout)."""
    B, S, D = x.shape
    assert S <= SEQ_LEN and D == D_MODEL and D % 2 == 0

    pe_flat = _sinusoidal_pe(S, D).reshape(-1).astype(x.dtype)            # (S*D,)
    F = S * D
    N = B * F
    parallel = pltpu.CompilerParams(dimension_semantics=("parallel",))

    if N % 128 == 0:
        # ---- lane-dense path: view x as (rows, 128); full-lane unmasked vst ----
        R = N // 128
        period = F // math.gcd(F, 128)                 # PE pattern period in rows
        unit = (period * 8) // math.gcd(period, 8)     # lcm(period, 8)
        if R <= max(unit, _TARGET_ROWS):
            tb = R                                     # single block
        else:
            tb = max(unit, (_TARGET_ROWS // unit) * unit)
        x_flat = x.reshape(R, 128)                     # free reshape (contiguous)
        # PE slab covering one block; alignment holds because every block starts
        # at a multiple of tb, itself a multiple of `period` (or single block).
        pe_block = pe_flat[jnp.arange(tb * 128) % F].reshape(tb, 128)
        out = pl.pallas_call(
            _add_pe_kernel,
            out_shape=jax.ShapeDtypeStruct((R, 128), x.dtype),
            grid=(pl.cdiv(R, tb),),
            in_specs=[pl.BlockSpec((tb, 128), lambda i: (i, 0)),
                      pl.BlockSpec((tb, 128), lambda i: (0, 0))],   # VMEM-resident
            out_specs=pl.BlockSpec((tb, 128), lambda i: (i, 0)),
            compiler_params=parallel,
        )(x_flat, pe_block)
        return out.reshape(B, S, D)

    # ---- fallback path: view x as (B, S*D); PE row broadcasts over sublanes ----
    x2 = x.reshape(B, F)
    pe_row = pe_flat.reshape(1, F)
    tb = B if B <= _TARGET_BATCH else _TARGET_BATCH
    out = pl.pallas_call(
        _add_pe_kernel,
        out_shape=jax.ShapeDtypeStruct((B, F), x.dtype),
        grid=(pl.cdiv(B, tb),),
        in_specs=[pl.BlockSpec((tb, F), lambda i: (i, 0)),
                  pl.BlockSpec((1, F), lambda i: (0, 0))],          # VMEM-resident
        out_specs=pl.BlockSpec((tb, F), lambda i: (i, 0)),
        compiler_params=parallel,
    )(x2, pe_row)
    return out.reshape(B, S, D)


def _reference(x: jax.Array) -> jax.Array:
    """Pure-JAX reference mirroring the torch buffer construction."""
    S = x.shape[1]
    pos = jnp.arange(SEQ_LEN, dtype=jnp.float32)[:, None]
    div_term = jnp.exp(jnp.arange(0, D_MODEL, 2, dtype=jnp.float32)
                       * (-math.log(10000.0) / D_MODEL))
    pe = jnp.zeros((SEQ_LEN, D_MODEL), jnp.float32)
    pe = pe.at[:, 0::2].set(jnp.sin(pos * div_term))
    pe = pe.at[:, 1::2].set(jnp.cos(pos * div_term))
    return x + pe[None, :S, :]


if __name__ == "__main__":
    key = jax.random.PRNGKey(0)

    # Small shape matching the module (exercises the (B, S*D) fallback path).
    B, S, D = 2, SEQ_LEN, D_MODEL
    x = jax.random.normal(key, (B, S, D), dtype=jnp.float32)
    out = jax.block_until_ready(positional_encoding_forward(x))
    assert out.shape == (B, S, D)
    assert jnp.allclose(out, _reference(x), atol=1e-5, rtol=1e-5)

    # Also exercise the lane-dense path (B % 16 == 0 -> (rows, 128) layout).
    x2 = jax.random.normal(jax.random.PRNGKey(0), (32, SEQ_LEN, D_MODEL), jnp.float32)
    out2 = jax.block_until_ready(positional_encoding_forward(x2))
    assert out2.shape == x2.shape
    assert jnp.allclose(out2, _reference(x2), atol=1e-5, rtol=1e-5)

    print("KERNEL_OK")
</pallas_src>

<mosaic_0001>
module attributes {stable_mosaic.version = 11 : i64} {
  func.func @_add_pe_kernel(%arg0: i32, %arg1: memref<2x56xf32, #tpu.memory_space<vmem>>, %arg2: memref<1x56xf32, #tpu.memory_space<vmem>>, %arg3: memref<2x56xf32, #tpu.memory_space<vmem>>) attributes {dimension_semantics = [#tpu.dimension_semantics<parallel>], iteration_bounds = array<i64: 1>, scalar_prefetch = 0 : i64, scratch_operands = 0 : i64, tpu.core_type = #tpu.core_type<tc>, window_params = [{transform_indices = @transform_0, window_bounds = array<i64: 2, 56>}, {pipeline_mode = #tpu.pipeline_mode<synchronous>, transform_indices = @transform_1, window_bounds = array<i64: 1, 56>}, {transform_indices = @transform_2, window_bounds = array<i64: 2, 56>}]} {
    %c0 = arith.constant 0 : index
    %c0_0 = arith.constant 0 : index
    %0 = vector.load %arg1[%c0, %c0_0] : memref<2x56xf32, #tpu.memory_space<vmem>>, vector<2x56xf32>
    %c0_1 = arith.constant 0 : index
    %c0_2 = arith.constant 0 : index
    %1 = vector.load %arg2[%c0_1, %c0_2] : memref<1x56xf32, #tpu.memory_space<vmem>>, vector<1x56xf32>
    %2 = vector.broadcast %1 : vector<1x56xf32> to vector<2x56xf32>
    %3 = arith.addf %0, %2 : vector<2x56xf32>
    %c0_3 = arith.constant 0 : index
    %c0_4 = arith.constant 0 : index
    %4 = vector.load %arg3[%c0_3, %c0_4] : memref<2x56xf32, #tpu.memory_space<vmem>>, vector<2x56xf32>
    tpu.vector_store %arg3[%c0_3, %c0_4], %3 {strides = array<i32>} : memref<2x56xf32, #tpu.memory_space<vmem>>, vector<2x56xf32>,
    return
  }
  func.func @transform_0(%arg0: i32) -> (i32, i32) {
    %c0_i32 = arith.constant 0 : i32
    %c0_i32_0 = arith.constant 0 : i32
    return %arg0, %c0_i32 : i32, i32
  }
  func.func @transform_1(%arg0: i32) -> (i32, i32) {
    %c0_i32 = arith.constant 0 : i32
    %c0_i32_0 = arith.constant 0 : i32
    %c0_i32_1 = arith.constant 0 : i32
    return %c0_i32, %c0_i32_0 : i32, i32
  }
  func.func @transform_2(%arg0: i32) -> (i32, i32) {
    %c0_i32 = arith.constant 0 : i32
    %c0_i32_0 = arith.constant 0 : i32
    return %arg0, %c0_i32 : i32, i32
  }
}

</mosaic_0001>

<bundles_post_ra>
// kernel: positional_encoding_forward.1
= control target key start
LH: loop header
LB: loop body
LE: loop exit
PB: predicated region body
PF: predicated region fallthrough
CT: control target
= control target key end

     0   :  { %vm20_vm0 = vcmask 451584   ;;  %s51_s0 = inlined_call_operand.vmem [shape: f32[2,56], index: 0, kind: input, shape index: {}]   ;;  %s52_s1 = inlined_call_operand.vmem [shape: f32[1,56], index: 1, kind: input, shape index: {}]   ;;  %s53_s2 = inlined_call_operand.vmem [shape: f32[2,56], index: 2, kind: output, shape index: {}]  }
   0x1   :  { %v11_v0 = vld [vmem:[%s51_s0] sm:$0x3] }
   0x2   :  { %v26_v1 = vld [vmem:[%s52_s1] ss:$0 sm:$0xff] }
   0x3   :  { %v19_v2 = vadd.f32 %v26_v1, %v11_v0 }
   0x5   :  { %21 = vst.msk [vmem:[%s53_s2] sm:$0x3] %vm20_vm0, %v19_v2 }

</bundles_post_ra>
